<compile_context>
chip_gen: v6e
topology: v6e:2x2x1
jax: 0.10.0
libtpu: 0.0.40
codegen_flags: <defaults>
</compile_context>

<pallas_src>
import functools
import math

import jax
import jax.numpy as jnp
from jax.experimental import pallas as pl
from jax.experimental.pallas import tpu as pltpu

TINY_NUMBER = 1e-6

_LANE = 128
_MAX_TILE = 32 * 1024                 # lanes (columns) per grid step
_VMEM_LIMIT_BYTES = 32 * 1024 * 1024  # explicit scoped-VMEM limit (safe on all gens)
_N_SPLITS = 2                         # leading "parallel" axis (2 TCs on v7x)


def _round_up(x, m):
    return (x + m - 1) // m * m


def _cdiv(a, b):
    return -(-a // b)


# ---------------------------------------------------------------------------
# Kernel: tiled reduction with VMEM vector accumulators, per-split partials
# ---------------------------------------------------------------------------
def _criterion_kernel(*args, have_mask, have_depth, n_cols):
    it = iter(args)
    pred_ref = next(it)                        # (C, T)  native dtype
    gt_ref = next(it)                          # (C, T)
    w_ref = next(it) if have_mask else None    # (C, T)  per-element weight
    dp_ref = next(it) if have_depth else None  # (1, T)
    dg_ref = next(it) if have_depth else None  # (1, T)
    out_ref = next(it)                         # (1, 8, 128) f32 per-split partials
    acc_sq = next(it)                          # (C, T) f32 scratch
    acc_w = next(it) if have_mask else None    # (C, T) f32 scratch
    acc_da = next(it) if have_depth else None  # (1, T) f32 scratch
    acc_dc = next(it) if have_depth else None  # (1, T) f32 scratch

    s = pl.program_id(0)                       # split (TensorCore on v7x)
    j = pl.program_id(1)                       # step within the split
    spp = pl.num_programs(1)
    tile = pred_ref.shape[-1]

    @pl.when(j == 0)
    def _init():
        acc_sq[...] = jnp.zeros_like(acc_sq)
        if have_mask:
            acc_w[...] = jnp.zeros_like(acc_w)
        if have_depth:
            acc_da[...] = jnp.zeros_like(acc_da)
            acc_dc[...] = jnp.zeros_like(acc_dc)

    # Global columns this (unclamped) step covers.  Columns >= n_cols are the
    # ragged tail of the last block, or a fully out-of-range step whose
    # index_map was clamped onto the last block -> contribute exactly zero.
    # (jnp.where, not multiply: the clipped part of a boundary block is garbage.)
    t = s * spp + j
    col = t * tile + jax.lax.broadcasted_iota(jnp.int32, (1, tile), 1)
    valid = col < n_cols                                      # (1, T) bool

    diff = pred_ref[...].astype(jnp.float32) - gt_ref[...].astype(jnp.float32)
    sq = diff * diff                                          # (C, T) f32, VPU only
    if have_mask:
        w = w_ref[...].astype(jnp.float32)
        acc_sq[...] += jnp.where(valid, sq * w, 0.0)
        acc_w[...] += jnp.where(valid, w, 0.0)
    else:
        acc_sq[...] += jnp.where(valid, sq, 0.0)

    if have_depth:
        dp = dp_ref[...].astype(jnp.float32)
        dg = dg_ref[...].astype(jnp.float32)
        dm = jnp.logical_and(valid, dg != 0.0)
        acc_da[...] += jnp.where(dm, jnp.abs(dp - dg), 0.0)
        acc_dc[...] += jnp.where(dm, 1.0, 0.0)

    # Single cross-lane reduce per split; scalars broadcast into fixed rows of
    # this split's (8, 128) output block and combined wrapper-side.
    @pl.when(j == spp - 1)
    def _finalize():
        row = jax.lax.broadcasted_iota(jnp.int32, (1, 8, 128), 1)
        vec = jnp.zeros((1, 8, 128), jnp.float32)
        vec = jnp.where(row == 0, jnp.sum(acc_sq[...]), vec)
        if have_mask:
            vec = jnp.where(row == 1, jnp.sum(acc_w[...]), vec)
        if have_depth:
            vec = jnp.where(row == 2, jnp.sum(acc_da[...]), vec)
            vec = jnp.where(row == 3, jnp.sum(acc_dc[...]), vec)
        out_ref[...] = vec


# ---------------------------------------------------------------------------
# Wrapper (mirrors Criterion.forward)
# ---------------------------------------------------------------------------
def criterion_forward(outputs, ray_batch, scalars_to_log, *, load_depth,
                      max_tile=_MAX_TILE):
    assert max_tile % _LANE == 0 and max_tile >= _LANE

    pred_rgb = jnp.asarray(outputs["rgb"])
    gt_rgb = jnp.asarray(ray_batch["rgb"])
    c = pred_rgb.shape[-1]
    n = math.prod(pred_rgb.shape[:-1]) if pred_rgb.ndim > 1 else 1

    have_mask = "mask" in outputs
    have_depth = (bool(load_depth) and "depth_pred" in outputs
                  and "depth" in ray_batch)

    # ---- lane-dense relayout (no transpose, no O(N) pad) --------------------
    # (N, C) -> (C, N) row-major reshape; all reduced quantities are full sums,
    # so the "scrambled" element order is irrelevant as long as pred/gt/weight
    # are flattened identically.
    pred2 = pred_rgb.reshape(c, n)
    gt2 = gt_rgb.reshape(c, n)

    tile = min(int(max_tile), _round_up(max(n, 1), _LANE))
    if tile >= n:                 # single block: pad at most 127 columns
        n_arr = tile
    else:                         # large batch: no pad; mask ragged tail in-kernel
        n_arr = n
    steps_total = _cdiv(n_arr, tile)
    n_splits = _N_SPLITS if steps_total >= _N_SPLITS else 1
    spp = _cdiv(steps_total, n_splits)
    last_blk = steps_total - 1

    def _cols(x):
        pad = n_arr - x.shape[-1]
        return x if pad == 0 else jnp.pad(x, ((0, 0), (0, pad)))

    def _blk(s, j):
        # Clamp fully out-of-range steps (uneven split) onto the last real
        # block; their contribution is zeroed in-kernel via the iota mask.
        return jnp.minimum(s * spp + j, last_blk)

    rgb_spec = pl.BlockSpec((c, tile), lambda s, j: (0, _blk(s, j)))
    row_spec = pl.BlockSpec((1, tile), lambda s, j: (0, _blk(s, j)))

    operands = [_cols(pred2), _cols(gt2)]
    in_specs = [rgb_spec, rgb_spec]
    scratch_shapes = [pltpu.VMEM((c, tile), jnp.float32)]

    if have_mask:
        mask = jnp.asarray(outputs["mask"]).reshape(n)
        # Replicate the per-ray mask into a per-element weight with the SAME
        # flattening as rgb (one N*C write; cheaper than transposing both rgb
        # arrays).  sum(weight) == C * sum(mask) gives the psnr denominator.
        w2 = jnp.broadcast_to(mask.astype(pred_rgb.dtype)[:, None],
                              (n, c)).reshape(c, n)
        operands.append(_cols(w2))
        in_specs.append(rgb_spec)
        scratch_shapes.append(pltpu.VMEM((c, tile), jnp.float32))

    if have_depth:
        dp2 = jnp.asarray(outputs["depth_pred"]).reshape(1, n)
        dg2 = jnp.asarray(ray_batch["depth"]).reshape(1, n)
        operands += [_cols(dp2), _cols(dg2)]
        in_specs += [row_spec, row_spec]
        scratch_shapes += [pltpu.VMEM((1, tile), jnp.float32),
                           pltpu.VMEM((1, tile), jnp.float32)]

    kernel = functools.partial(_criterion_kernel, have_mask=have_mask,
                               have_depth=have_depth, n_cols=n)

    parts = pl.pallas_call(
        kernel,
        out_shape=jax.ShapeDtypeStruct((n_splits, 8, _LANE), jnp.float32),
        grid_spec=pltpu.PrefetchScalarGridSpec(
            num_scalar_prefetch=0,
            grid=(n_splits, spp),
            in_specs=in_specs,
            out_specs=pl.BlockSpec((1, 8, _LANE), lambda s, j: (s, 0, 0)),
            scratch_shapes=scratch_shapes,
        ),
        compiler_params=pltpu.CompilerParams(
            dimension_semantics=("parallel", "arbitrary"),
            vmem_limit_bytes=_VMEM_LIMIT_BYTES),
    )(*operands)

    # ---- tiny wrapper-side combine (a handful of scalars) -------------------
    sums = parts[:, :, 0].sum(axis=0)                  # (8,) per-quantity totals
    if have_mask:
        psnr_loss = sums[0] / (sums[1] + jnp.float32(TINY_NUMBER))
    else:
        psnr_loss = sums[0] / jnp.float32(n * c)
    total = psnr_loss
    if have_depth:
        total = total + sums[2] / sums[3]              # NaN if no valid depth (as torch)
    return total, scalars_to_log


# ---------------------------------------------------------------------------
# Pure-JAX reference for sanity checking
# ---------------------------------------------------------------------------
def _reference(outputs, ray_batch, load_depth):
    pred_rgb = jnp.asarray(outputs["rgb"]).astype(jnp.float32)
    gt_rgb = jnp.asarray(ray_batch["rgb"]).astype(jnp.float32)
    sq = (pred_rgb - gt_rgb) ** 2
    if "mask" in outputs:
        m = jnp.asarray(outputs["mask"]).astype(jnp.float32).reshape(-1)[:, None]
        psnr = jnp.sum(sq * m) / (jnp.sum(m) * pred_rgb.shape[-1] + TINY_NUMBER)
    else:
        psnr = jnp.mean(sq)
    depth_loss = 0.0
    if load_depth and "depth_pred" in outputs and "depth" in ray_batch:
        dg = jnp.asarray(ray_batch["depth"]).astype(jnp.float32)
        dp = jnp.asarray(outputs["depth_pred"]).astype(jnp.float32)
        dm = (dg != 0).astype(jnp.float32)
        depth_loss = jnp.sum(jnp.abs(dp - dg) * dm) / jnp.sum(dm)
    return psnr + depth_loss


if __name__ == "__main__":
    key = jax.random.PRNGKey(0)
    ks = jax.random.split(key, 6)

    # Case 1: f32, mask + depth, N not a multiple of 128 (single padded tile).
    N, C = 200, 3
    pred_rgb = jax.random.uniform(ks[0], (N, C), jnp.float32)
    gt_rgb = jax.random.uniform(ks[1], (N, C), jnp.float32)
    mask = (jax.random.uniform(ks[2], (N,)) > 0.3).astype(jnp.float32)
    depth_pred = jax.random.uniform(ks[3], (N,), jnp.float32) * 5.0
    depth_gt = (jax.random.uniform(ks[4], (N,), jnp.float32) * 5.0
                * (jax.random.uniform(ks[5], (N,)) > 0.25).astype(jnp.float32))
    outputs = {"rgb": pred_rgb, "mask": mask, "depth_pred": depth_pred}
    ray_batch = {"rgb": gt_rgb, "depth": depth_gt}
    loss, _ = criterion_forward(outputs, ray_batch, {}, load_depth=True)
    loss = jax.block_until_ready(loss)
    ref = _reference(outputs, ray_batch, load_depth=True)
    assert jnp.allclose(loss, ref, rtol=1e-5, atol=1e-6), (loss, ref)

    # Case 2: bf16 inputs, no mask / no depth (native dtype + unmasked mean path).
    pred2 = jax.random.uniform(ks[0], (N, C), jnp.float32).astype(jnp.bfloat16)
    gt2 = jax.random.uniform(ks[1], (N, C), jnp.float32).astype(jnp.bfloat16)
    loss2, _ = criterion_forward({"rgb": pred2}, {"rgb": gt2}, {}, load_depth=False)
    loss2 = jax.block_until_ready(loss2)
    ref2 = _reference({"rgb": pred2}, {"rgb": gt2}, load_depth=False)
    assert jnp.allclose(loss2, ref2, rtol=2e-2, atol=1e-4), (loss2, ref2)

    # Case 3: multi-step grid + 2-way split + ragged last tile + clamped OOB
    # step (small max_tile override exercises the exact code paths used for
    # large ray batches while keeping the test shapes small).
    N3 = 1200
    pred3 = jax.random.uniform(ks[0], (N3, C), jnp.float32)
    gt3 = jax.random.uniform(ks[1], (N3, C), jnp.float32)
    mask3 = (jax.random.uniform(ks[2], (N3,)) > 0.5).astype(jnp.float32)
    dp3 = jax.random.uniform(ks[3], (N3,), jnp.float32) * 5.0
    dg3 = (jax.random.uniform(ks[4], (N3,), jnp.float32) * 5.0
           * (jax.random.uniform(ks[5], (N3,)) > 0.25).astype(jnp.float32))
    out3 = {"rgb": pred3, "mask": mask3, "depth_pred": dp3}
    rb3 = {"rgb": gt3, "depth": dg3}
    loss3, _ = criterion_forward(out3, rb3, {}, load_depth=True, max_tile=256)
    loss3 = jax.block_until_ready(loss3)
    ref3 = _reference(out3, rb3, load_depth=True)
    assert jnp.allclose(loss3, ref3, rtol=1e-5, atol=1e-6), (loss3, ref3)

    print("KERNEL_OK")
</pallas_src>

<mosaic_0001>
module attributes {stable_mosaic.version = 11 : i64} {
  func.func @_criterion_kernel(%arg0: i32, %arg1: i32, %arg2: memref<3x256xf32, #tpu.memory_space<vmem>>, %arg3: memref<3x256xf32, #tpu.memory_space<vmem>>, %arg4: memref<3x256xf32, #tpu.memory_space<vmem>>, %arg5: memref<1x256xf32, #tpu.memory_space<vmem>>, %arg6: memref<1x256xf32, #tpu.memory_space<vmem>>, %arg7: memref<1x8x128xf32, #tpu.memory_space<vmem>>, %arg8: memref<3x256xf32, #tpu.memory_space<vmem>>, %arg9: memref<3x256xf32, #tpu.memory_space<vmem>>, %arg10: memref<1x256xf32, #tpu.memory_space<vmem>>, %arg11: memref<1x256xf32, #tpu.memory_space<vmem>>) attributes {dimension_semantics = [#tpu.dimension_semantics<parallel>, #tpu.dimension_semantics<arbitrary>], iteration_bounds = array<i64: 1, 1>, scalar_prefetch = 0 : i64, scratch_operands = 4 : i64, tpu.core_type = #tpu.core_type<tc>, window_params = [{transform_indices = @transform_0, window_bounds = array<i64: 3, 256>}, {transform_indices = @transform_1, window_bounds = array<i64: 3, 256>}, {transform_indices = @transform_2, window_bounds = array<i64: 3, 256>}, {transform_indices = @transform_3, window_bounds = array<i64: 1, 256>}, {transform_indices = @transform_4, window_bounds = array<i64: 1, 256>}, {transform_indices = @transform_5, window_bounds = array<i64: 1, 8, 128>}]} {
    %c0_i32 = arith.constant 0 : i32
    %0 = arith.cmpi eq, %arg1, %c0_i32 : i32
    %1 = arith.extui %0 : i1 to i32
    %c0_i32_0 = arith.constant 0 : i32
    %2 = arith.cmpi ne, %1, %c0_i32_0 : i32
    scf.if %2 {
      %cst_33 = arith.constant 0.000000e+00 : f32
      %52 = vector.broadcast %cst_33 : f32 to vector<3x256xf32>
      %c0_34 = arith.constant 0 : index
      %c0_35 = arith.constant 0 : index
      %53 = vector.load %arg8[%c0_34, %c0_35] : memref<3x256xf32, #tpu.memory_space<vmem>>, vector<3x256xf32>
      tpu.vector_store %arg8[%c0_34, %c0_35], %52 {strides = array<i32>} : memref<3x256xf32, #tpu.memory_space<vmem>>, vector<3x256xf32>,
      %cst_36 = arith.constant 0.000000e+00 : f32
      %54 = vector.broadcast %cst_36 : f32 to vector<3x256xf32>
      %c0_37 = arith.constant 0 : index
      %c0_38 = arith.constant 0 : index
      %55 = vector.load %arg9[%c0_37, %c0_38] : memref<3x256xf32, #tpu.memory_space<vmem>>, vector<3x256xf32>
      tpu.vector_store %arg9[%c0_37, %c0_38], %54 {strides = array<i32>} : memref<3x256xf32, #tpu.memory_space<vmem>>, vector<3x256xf32>,
      %cst_39 = arith.constant 0.000000e+00 : f32
      %56 = vector.broadcast %cst_39 : f32 to vector<1x256xf32>
      %c0_40 = arith.constant 0 : index
      %c0_41 = arith.constant 0 : index
      %57 = vector.load %arg10[%c0_40, %c0_41] : memref<1x256xf32, #tpu.memory_space<vmem>>, vector<1x256xf32>
      tpu.vector_store %arg10[%c0_40, %c0_41], %56 {strides = array<i32>} : memref<1x256xf32, #tpu.memory_space<vmem>>, vector<1x256xf32>,
      %cst_42 = arith.constant 0.000000e+00 : f32
      %58 = vector.broadcast %cst_42 : f32 to vector<1x256xf32>
      %c0_43 = arith.constant 0 : index
      %c0_44 = arith.constant 0 : index
      %59 = vector.load %arg11[%c0_43, %c0_44] : memref<1x256xf32, #tpu.memory_space<vmem>>, vector<1x256xf32>
      tpu.vector_store %arg11[%c0_43, %c0_44], %58 {strides = array<i32>} : memref<1x256xf32, #tpu.memory_space<vmem>>, vector<1x256xf32>,
    } else {
    }
    %c1_i32 = arith.constant 1 : i32
    %3 = arith.muli %arg0, %c1_i32 : i32
    %4 = arith.addi %3, %arg1 : i32
    %c256_i32 = arith.constant 256 : i32
    %5 = arith.muli %4, %c256_i32 : i32
    %6 = tpu.iota {dimensions = array<i32: 1>} : vector<1x256xi32>
    %7 = vector.broadcast %5 : i32 to vector<1x256xi32>
    %8 = arith.addi %7, %6 : vector<1x256xi32>
    %c200_i32 = arith.constant 200 : i32
    %9 = vector.broadcast %c200_i32 : i32 to vector<1x256xi32>
    %10 = arith.cmpi slt, %8, %9 : vector<1x256xi32>
    %c0 = arith.constant 0 : index
    %c0_1 = arith.constant 0 : index
    %11 = vector.load %arg2[%c0, %c0_1] : memref<3x256xf32, #tpu.memory_space<vmem>>, vector<3x256xf32>
    %c0_2 = arith.constant 0 : index
    %c0_3 = arith.constant 0 : index
    %12 = vector.load %arg3[%c0_2, %c0_3] : memref<3x256xf32, #tpu.memory_space<vmem>>, vector<3x256xf32>
    %13 = arith.subf %11, %12 : vector<3x256xf32>
    %14 = arith.mulf %13, %13 : vector<3x256xf32>
    %c0_4 = arith.constant 0 : index
    %c0_5 = arith.constant 0 : index
    %15 = vector.load %arg4[%c0_4, %c0_5] : memref<3x256xf32, #tpu.memory_space<vmem>>, vector<3x256xf32>
    %c0_6 = arith.constant 0 : index
    %c0_7 = arith.constant 0 : index
    %16 = vector.load %arg8[%c0_6, %c0_7] : memref<3x256xf32, #tpu.memory_space<vmem>>, vector<3x256xf32>
    %17 = arith.mulf %14, %15 : vector<3x256xf32>
    %cst = arith.constant 0.000000e+00 : f32
    %18 = vector.shape_cast %10 : vector<1x256xi1> to vector<1x256xi1>
    %19 = vector.broadcast %18 : vector<1x256xi1> to vector<3x256xi1>
    %20 = vector.broadcast %cst : f32 to vector<3x256xf32>
    %21 = arith.select %19, %17, %20 : vector<3x256xi1>, vector<3x256xf32>
    %22 = arith.addf %16, %21 : vector<3x256xf32>
    %c0_8 = arith.constant 0 : index
    %c0_9 = arith.constant 0 : index
    %23 = vector.load %arg8[%c0_8, %c0_9] : memref<3x256xf32, #tpu.memory_space<vmem>>, vector<3x256xf32>
    tpu.vector_store %arg8[%c0_8, %c0_9], %22 {strides = array<i32>} : memref<3x256xf32, #tpu.memory_space<vmem>>, vector<3x256xf32>,
    %c0_10 = arith.constant 0 : index
    %c0_11 = arith.constant 0 : index
    %24 = vector.load %arg9[%c0_10, %c0_11] : memref<3x256xf32, #tpu.memory_space<vmem>>, vector<3x256xf32>
    %cst_12 = arith.constant 0.000000e+00 : f32
    %25 = vector.shape_cast %10 : vector<1x256xi1> to vector<1x256xi1>
    %26 = vector.broadcast %25 : vector<1x256xi1> to vector<3x256xi1>
    %27 = vector.broadcast %cst_12 : f32 to vector<3x256xf32>
    %28 = arith.select %26, %15, %27 : vector<3x256xi1>, vector<3x256xf32>
    %29 = arith.addf %24, %28 : vector<3x256xf32>
    %c0_13 = arith.constant 0 : index
    %c0_14 = arith.constant 0 : index
    %30 = vector.load %arg9[%c0_13, %c0_14] : memref<3x256xf32, #tpu.memory_space<vmem>>, vector<3x256xf32>
    tpu.vector_store %arg9[%c0_13, %c0_14], %29 {strides = array<i32>} : memref<3x256xf32, #tpu.memory_space<vmem>>, vector<3x256xf32>,
    %c0_15 = arith.constant 0 : index
    %c0_16 = arith.constant 0 : index
    %31 = vector.load %arg5[%c0_15, %c0_16] : memref<1x256xf32, #tpu.memory_space<vmem>>, vector<1x256xf32>
    %c0_17 = arith.constant 0 : index
    %c0_18 = arith.constant 0 : index
    %32 = vector.load %arg6[%c0_17, %c0_18] : memref<1x256xf32, #tpu.memory_space<vmem>>, vector<1x256xf32>
    %cst_19 = arith.constant 0.000000e+00 : f32
    %33 = vector.broadcast %cst_19 : f32 to vector<1x256xf32>
    %34 = arith.cmpf one, %32, %33 : vector<1x256xf32>
    %35 = arith.andi %10, %34 : vector<1x256xi1>
    %c0_20 = arith.constant 0 : index
    %c0_21 = arith.constant 0 : index
    %36 = vector.load %arg10[%c0_20, %c0_21] : memref<1x256xf32, #tpu.memory_space<vmem>>, vector<1x256xf32>
    %37 = arith.subf %31, %32 : vector<1x256xf32>
    %38 = math.absf %37 : vector<1x256xf32>
    %cst_22 = arith.constant 0.000000e+00 : f32
    %39 = vector.broadcast %cst_22 : f32 to vector<1x256xf32>
    %40 = arith.select %35, %38, %39 : vector<1x256xi1>, vector<1x256xf32>
    %41 = arith.addf %36, %40 : vector<1x256xf32>
    %c0_23 = arith.constant 0 : index
    %c0_24 = arith.constant 0 : index
    %42 = vector.load %arg10[%c0_23, %c0_24] : memref<1x256xf32, #tpu.memory_space<vmem>>, vector<1x256xf32>
    tpu.vector_store %arg10[%c0_23, %c0_24], %41 {strides = array<i32>} : memref<1x256xf32, #tpu.memory_space<vmem>>, vector<1x256xf32>,
    %c0_25 = arith.constant 0 : index
    %c0_26 = arith.constant 0 : index
    %43 = vector.load %arg11[%c0_25, %c0_26] : memref<1x256xf32, #tpu.memory_space<vmem>>, vector<1x256xf32>
    %cst_27 = arith.constant 1.000000e+00 : f32
    %cst_28 = arith.constant 0.000000e+00 : f32
    %44 = vector.broadcast %cst_27 : f32 to vector<1x256xf32>
    %45 = vector.broadcast %cst_28 : f32 to vector<1x256xf32>
    %46 = arith.select %35, %44, %45 : vector<1x256xi1>, vector<1x256xf32>
    %47 = arith.addf %43, %46 : vector<1x256xf32>
    %c0_29 = arith.constant 0 : index
    %c0_30 = arith.constant 0 : index
    %48 = vector.load %arg11[%c0_29, %c0_30] : memref<1x256xf32, #tpu.memory_space<vmem>>, vector<1x256xf32>
    tpu.vector_store %arg11[%c0_29, %c0_30], %47 {strides = array<i32>} : memref<1x256xf32, #tpu.memory_space<vmem>>, vector<1x256xf32>,
    %c0_i32_31 = arith.constant 0 : i32
    %49 = arith.cmpi eq, %arg1, %c0_i32_31 : i32
    %50 = arith.extui %49 : i1 to i32
    %c0_i32_32 = arith.constant 0 : i32
    %51 = arith.cmpi ne, %50, %c0_i32_32 : i32
    scf.if %51 {
      %52 = tpu.iota {dimensions = array<i32: 1>} : vector<1x8x128xi32>
      %cst_33 = arith.constant 0.000000e+00 : f32
      %53 = vector.broadcast %cst_33 : f32 to vector<1x8x128xf32>
      %c0_i32_34 = arith.constant 0 : i32
      %54 = vector.broadcast %c0_i32_34 : i32 to vector<1x8x128xi32>
      %55 = arith.cmpi eq, %52, %54 : vector<1x8x128xi32>
      %c0_35 = arith.constant 0 : index
      %c0_36 = arith.constant 0 : index
      %56 = vector.load %arg8[%c0_35, %c0_36] : memref<3x256xf32, #tpu.memory_space<vmem>>, vector<3x256xf32>
      %57 = vector.shape_cast %56 : vector<3x256xf32> to vector<1x3x256xf32>
      %cst_37 = arith.constant dense<0.000000e+00> : vector<1xf32>
      %58 = vector.multi_reduction <add>, %57, %cst_37 [1, 2] : vector<1x3x256xf32> to vector<1xf32>
      %59 = vector.shape_cast %58 : vector<1xf32> to vector<1x1x1xf32>
      %60 = vector.extract %59[0, 0, 0] : f32 from vector<1x1x1xf32>
      %61 = vector.broadcast %60 : f32 to vector<1x8x128xf32>
      %62 = arith.select %55, %61, %53 : vector<1x8x128xi1>, vector<1x8x128xf32>
      %c1_i32_38 = arith.constant 1 : i32
      %63 = vector.broadcast %c1_i32_38 : i32 to vector<1x8x128xi32>
      %64 = arith.cmpi eq, %52, %63 : vector<1x8x128xi32>
      %c0_39 = arith.constant 0 : index
      %c0_40 = arith.constant 0 : index
      %65 = vector.load %arg9[%c0_39, %c0_40] : memref<3x256xf32, #tpu.memory_space<vmem>>, vector<3x256xf32>
      %66 = vector.shape_cast %65 : vector<3x256xf32> to vector<1x3x256xf32>
      %cst_41 = arith.constant dense<0.000000e+00> : vector<1xf32>
      %67 = vector.multi_reduction <add>, %66, %cst_41 [1, 2] : vector<1x3x256xf32> to vector<1xf32>
      %68 = vector.shape_cast %67 : vector<1xf32> to vector<1x1x1xf32>
      %69 = vector.extract %68[0, 0, 0] : f32 from vector<1x1x1xf32>
      %70 = vector.broadcast %69 : f32 to vector<1x8x128xf32>
      %71 = arith.select %64, %70, %62 : vector<1x8x128xi1>, vector<1x8x128xf32>
      %c2_i32 = arith.constant 2 : i32
      %72 = vector.broadcast %c2_i32 : i32 to vector<1x8x128xi32>
      %73 = arith.cmpi eq, %52, %72 : vector<1x8x128xi32>
      %c0_42 = arith.constant 0 : index
      %c0_43 = arith.constant 0 : index
      %74 = vector.load %arg10[%c0_42, %c0_43] : memref<1x256xf32, #tpu.memory_space<vmem>>, vector<1x256xf32>
      %75 = vector.shape_cast %74 : vector<1x256xf32> to vector<1x1x256xf32>
      %cst_44 = arith.constant dense<0.000000e+00> : vector<1xf32>
      %76 = vector.multi_reduction <add>, %75, %cst_44 [1, 2] : vector<1x1x256xf32> to vector<1xf32>
      %77 = vector.shape_cast %76 : vector<1xf32> to vector<1x1x1xf32>
      %78 = vector.extract %77[0, 0, 0] : f32 from vector<1x1x1xf32>
      %79 = vector.broadcast %78 : f32 to vector<1x8x128xf32>
      %80 = arith.select %73, %79, %71 : vector<1x8x128xi1>, vector<1x8x128xf32>
      %c3_i32 = arith.constant 3 : i32
      %81 = vector.broadcast %c3_i32 : i32 to vector<1x8x128xi32>
      %82 = arith.cmpi eq, %52, %81 : vector<1x8x128xi32>
      %c0_45 = arith.constant 0 : index
      %c0_46 = arith.constant 0 : index
      %83 = vector.load %arg11[%c0_45, %c0_46] : memref<1x256xf32, #tpu.memory_space<vmem>>, vector<1x256xf32>
      %84 = vector.shape_cast %83 : vector<1x256xf32> to vector<1x1x256xf32>
      %cst_47 = arith.constant dense<0.000000e+00> : vector<1xf32>
      %85 = vector.multi_reduction <add>, %84, %cst_47 [1, 2] : vector<1x1x256xf32> to vector<1xf32>
      %86 = vector.shape_cast %85 : vector<1xf32> to vector<1x1x1xf32>
      %87 = vector.extract %86[0, 0, 0] : f32 from vector<1x1x1xf32>
      %88 = vector.broadcast %87 : f32 to vector<1x8x128xf32>
      %89 = arith.select %82, %88, %80 : vector<1x8x128xi1>, vector<1x8x128xf32>
      %c0_48 = arith.constant 0 : index
      %c0_49 = arith.constant 0 : index
      %c0_50 = arith.constant 0 : index
      %90 = vector.load %arg7[%c0_48, %c0_49, %c0_50] : memref<1x8x128xf32, #tpu.memory_space<vmem>>, vector<1x8x128xf32>
      tpu.vector_store %arg7[%c0_48, %c0_49, %c0_50], %89 {strides = array<i32>} : memref<1x8x128xf32, #tpu.memory_space<vmem>>, vector<1x8x128xf32>,
    } else {
    }
    return
  }
  func.func @transform_0(%arg0: i32, %arg1: i32) -> (i32, i32) {
    %c1_i32 = arith.constant 1 : i32
    %0 = arith.muli %arg0, %c1_i32 : i32
    %1 = arith.addi %0, %arg1 : i32
    %c0_i32 = arith.constant 0 : i32
    %2 = arith.minsi %1, %c0_i32 : i32
    %c0_i32_0 = arith.constant 0 : i32
    %c0_i32_1 = arith.constant 0 : i32
    return %c0_i32_0, %2 : i32, i32
  }
  func.func @transform_1(%arg0: i32, %arg1: i32) -> (i32, i32) {
    %c1_i32 = arith.constant 1 : i32
    %0 = arith.muli %arg0, %c1_i32 : i32
    %1 = arith.addi %0, %arg1 : i32
    %c0_i32 = arith.constant 0 : i32
    %2 = arith.minsi %1, %c0_i32 : i32
    %c0_i32_0 = arith.constant 0 : i32
    %c0_i32_1 = arith.constant 0 : i32
    return %c0_i32_0, %2 : i32, i32
  }
  func.func @transform_2(%arg0: i32, %arg1: i32) -> (i32, i32) {
    %c1_i32 = arith.constant 1 : i32
    %0 = arith.muli %arg0, %c1_i32 : i32
    %1 = arith.addi %0, %arg1 : i32
    %c0_i32 = arith.constant 0 : i32
    %2 = arith.minsi %1, %c0_i32 : i32
    %c0_i32_0 = arith.constant 0 : i32
    %c0_i32_1 = arith.constant 0 : i32
    return %c0_i32_0, %2 : i32, i32
  }
  func.func @transform_3(%arg0: i32, %arg1: i32) -> (i32, i32) {
    %c1_i32 = arith.constant 1 : i32
    %0 = arith.muli %arg0, %c1_i32 : i32
    %1 = arith.addi %0, %arg1 : i32
    %c0_i32 = arith.constant 0 : i32
    %2 = arith.minsi %1, %c0_i32 : i32
    %c0_i32_0 = arith.constant 0 : i32
    %c0_i32_1 = arith.constant 0 : i32
    return %c0_i32_0, %2 : i32, i32
  }
  func.func @transform_4(%arg0: i32, %arg1: i32) -> (i32, i32) {
    %c1_i32 = arith.constant 1 : i32
    %0 = arith.muli %arg0, %c1_i32 : i32
    %1 = arith.addi %0, %arg1 : i32
    %c0_i32 = arith.constant 0 : i32
    %2 = arith.minsi %1, %c0_i32 : i32
    %c0_i32_0 = arith.constant 0 : i32
    %c0_i32_1 = arith.constant 0 : i32
    return %c0_i32_0, %2 : i32, i32
  }
  func.func @transform_5(%arg0: i32, %arg1: i32) -> (i32, i32, i32) {
    %c0_i32 = arith.constant 0 : i32
    %c0_i32_0 = arith.constant 0 : i32
    %c0_i32_1 = arith.constant 0 : i32
    return %arg0, %c0_i32, %c0_i32_0 : i32, i32, i32
  }
}

</mosaic_0001>

<bundles_post_ra>
// kernel: tpu_custom_call.1
= control target key start
LH: loop header
LB: loop body
LE: loop exit
PB: predicated region body
PF: predicated region fallthrough
CT: control target
= control target key end

     0   :  { %10 = vsyncpa [#allocation7], 0  ;;  %s605_s0 = inlined_call_operand.hbm [shape: f32[3,256], index: 0, kind: input, shape index: {}]   ;;  %s606_s1 = inlined_call_operand.hbm [shape: f32[3,256], index: 1, kind: input, shape index: {}]   ;;  %s607_s2 = inlined_call_operand.hbm [shape: f32[3,256], index: 2, kind: input, shape index: {}]   ;;  %s608_s3 = inlined_call_operand.vmem [shape: f32[1,256], index: 3, kind: input, shape index: {}]   ;;  %s609_s4 = inlined_call_operand.vmem [shape: f32[1,256], index: 4, kind: input, shape index: {}]   ;;  %s610_s5 = inlined_call_operand.hbm [shape: f32[1,8,128], index: 5, kind: output, shape index: {}]  }
   0x1   :  { %11 = vsyncpa [#allocation10], 0 }
   0x2   :  { %12 = vsyncpa [#allocation8], 0  ;;  %s510_s18 = smov [#allocation9]   ;;  %s511_s20 = smov [#allocation6]  }
   0x3   :  { %s41_s19 = sshll.u32 %s510_s18, 4  ;;  %s25_s21 = sshll.u32 %s511_s20, 4  ;;  %s42_s19 = int_to_ptr.vmem [resolvable:$true] %s41_s19  ;;  %s26_s21 = int_to_ptr.vmem [resolvable:$true] %s25_s21 }
   0x4   :  { %s432_s22 = scalar_lea.vmem %s42_s19, 128  ;;  %p437_p1 = scmp.lt.s32.totalorder %s42_s19, %s42_s19 }
   0x5   :  { %p433_p0 = scmp.ne.s32.totalorder %s42_s19, %s432_s22  ;;  %p438_p2 = scmp.lt.s32.totalorder %s432_s22, %s432_s22 }
   0x7   :  { %p439_p3 = por %p438_p2, %p437_p1 }
   0x9   :  { %p440_p4 = pnand %p439_p3, %p433_p0 }
   0xb   :  { %443 = shalt.err (!%p440_p4)
}
   0xc   :  { %44 = dma.hbm_to_vmem [thread:$0]  %s606_s1, 128, %s42_s19, [#allocation10]  }
   0xd   :  { %s452_s25 = scalar_lea.vmem %s26_s21, 128  ;;  %p457_p6 = scmp.lt.s32.totalorder %s26_s21, %s26_s21 }
   0xe   :  { %p453_p5 = scmp.ne.s32.totalorder %s26_s21, %s452_s25  ;;  %p458_p7 = scmp.lt.s32.totalorder %s452_s25, %s452_s25 }
  0x10   :  { %p459_p8 = por %p458_p7, %p457_p6 }
  0x12   :  { %p460_p9 = pnand %p459_p8, %p453_p5 }
  0x14   :  { %463 = shalt.err (!%p460_p9)
}
  0x15   :  { %28 = dma.hbm_to_vmem [thread:$0]  %s605_s0, 128, %s26_s21, [#allocation7]  }
  0x16   :  { %s512_s28 = smov [#allocation11]  }
  0x17   :  { %s57_s29 = sshll.u32 %s512_s28, 4  ;;  %s58_s29 = int_to_ptr.vmem [resolvable:$true] %s57_s29 }
  0x18   :  { %s472_s30 = scalar_lea.vmem %s58_s29, 128  ;;  %p477_p11 = scmp.lt.s32.totalorder %s58_s29, %s58_s29 }
  0x19   :  { %p473_p10 = scmp.ne.s32.totalorder %s58_s29, %s472_s30  ;;  %p478_p12 = scmp.lt.s32.totalorder %s472_s30, %s472_s30 }
  0x1b   :  { %p479_p13 = por %p478_p12, %p477_p11 }
  0x1d   :  { %p480_p0 = pnand %p479_p13, %p473_p10 }
  0x1f   :  { %483 = shalt.err (!%p480_p0)
}
  0x20   :  { %60 = dma.hbm_to_vmem [thread:$0]  %s607_s2, 128, %s58_s29, [#allocation10]  }
  0x21   :  { %504 = dma.done.wait [#allocation7], 128  }
  0x22   :  { %505 = vsyncadd [#allocation7], 4294967168 }
  0x23   :  { %506 = dma.done.wait [#allocation10], 256  }
  0x24   :  { %507 = vsyncadd [#allocation10], 4294967040  ;;  %v150_v0 = vlaneseq  ;;  %v513_v1 = vmov 0.0   ;;  %v514_v8 = vmov 1966171168   ;;  %v515_v19 = vmov 0  }
  0x25   :  { %148 = vst [vmem:[#allocation2] sm:$0x77] %v513_v1  ;;  %149 = vst [vmem:[#allocation3] sm:$0x77] %v513_v1  ;;  %v236_v9 = vunpack.c.l.s4 %v514_v8  ;;  %v166_v10 = vld [vmem:[#allocation6] sm:$0x77] }
  0x26   :  { %v159_v2 = vand.u32 127, %v150_v0  ;;  %vm556_vm0 = vcmp.lt.s32.totalorder %v150_v0, 256  ;;  %v560_v4 = vshrl.u32 %v150_v0, 7  ;;  %v167_v11 = vld [vmem:[#allocation9] sm:$0x77]  ;;  %vm289_vm6 = vcmask 1042432  }
  0x27   :  { %154 = vst.msk [vmem:[#allocation4] sm:$0x3] %vm556_vm0, %v513_v1  ;;  %155 = vst.msk [vmem:[#allocation5] sm:$0x3] %vm556_vm0, %v513_v1  ;;  %v170_v12 = vld [vmem:[#allocation11] sm:$0x77]  ;;  %v168_v13 = vsub.f32 %v166_v10, %v167_v11  ;;  %v237_v21 = vunpack.c.0.s8 %v236_v9 }
  0x28   :  { %v160_v5 = vadd.s32 128, %v159_v2  ;;  %v567_v6 = vsub.s32 0, %v560_v4  ;;  %v570_v7 = vsub.s32 1, %v560_v4  ;;  %v200_v14 = vld [vmem:[%s608_s3] sm:$0x3]  ;;  %v190_v16 = vcombine.high %v170_v12, %v170_v12  ;;  %s516_s10 = smov [#allocation12]  }
  0x29   :  { %v201_v15 = vld [vmem:[%s609_s4] sm:$0x3]  ;;  %v169_v18 = vmul.f32 %v168_v13, %v168_v13  ;;  %v240_v32 = vsub.s32 %v237_v21, %v560_v4  ;;  %vm336_vm7 = vcmask 1040384   ;;  %vm284_vm8 = vcmp.eq.s32.totalorder %v560_v4, 0  ;;  %s385_s11 = sshll.u32 %s516_s10, 4  ;;  %s386_s11 = int_to_ptr.vmem [resolvable:$true] %s385_s11 }
  0x2a   :  { %vm165_vm1 = vcmp.lt.s32.totalorder %v160_v5, 200  ;;  %vm202_vm2 = vcmp.ne.f32.partialorder %v201_v15, 0.0  ;;  %v217_v17 = vsub.f32 %v200_v14, %v201_v15  ;;  %vm304_vm9 = vcmp.eq.s32.totalorder %v560_v4, 1  ;;  %s484_s13 = scalar_lea.vmem %s386_s11, 128  ;;  %p489_p2 = scmp.lt.s32.totalorder %s386_s11, %s386_s11 }
  0x2b   :  { %v203_v20 = vsel %vm202_vm2, 1, %v515_v19  ;;  %v193_v22 = vsel %vm165_vm1, %v190_v16, 0.0  ;;  %v172_v28 = vmul.f32 %v170_v12, %v169_v18  ;;  %vm323_vm10 = vcmp.eq.s32.totalorder %v560_v4, 2  ;;  %p485_p1 = scmp.ne.s32.totalorder %s386_s11, %s484_s13  ;;  %p490_p3 = scmp.lt.s32.totalorder %s484_s13, %s484_s13 }
  0x2c   :  { %v207_v23 = vrot.slane %v203_v20, %v567_v6  ;;  %v211_v24 = vrot.slane %v203_v20, %v570_v7  ;;  %v218_v25 = vand.u32 2147483647, %v217_v17  ;;  %v188_v26 = vld [vmem:[#allocation3] sm:$0x77]  ;;  %v196_v27 = vcombine.low %v170_v12, %v193_v22  ;;  %v171_v38 = vld [vmem:[#allocation2] sm:$0x77] }
  0x2d   :  { %v178_v31 = vcombine.high %v172_v28, %v172_v28  ;;  %vm351_vm11 = vcmp.eq.s32.totalorder %v560_v4, 3  ;;  %p491_p4 = por %p490_p3, %p489_p2 }
  0x2e   :  { %vm212_vm3 = vcmp.ne.s32.totalorder %v207_v23, 0  ;;  %vm213_vm4 = vcmp.ne.s32.totalorder %v211_v24, 0  ;;  %v223_v29 = vrot.slane %v218_v25, %v567_v6  ;;  %v227_v30 = vrot.slane %v218_v25, %v570_v7  ;;  %v216_v46 = vld [vmem:[#allocation4] sm:$0x3]  ;;  %v256_v47 = vld [vmem:[#allocation5] sm:$0x3] }
  0x2f   :  { %vm215_vm5 = vmand %vm165_vm1, %vm213_vm4  ;;  %v257_v33 = vsel %vm212_vm3, 1.0, %v513_v1  ;;  %v198_v34 = vadd.f32 %v196_v27, %v188_v26  ;;  %v181_v39 = vsel %vm165_vm1, %v178_v31, 0.0  ;;  %p492_p5 = pnand %p491_p4, %p485_p1 }
  0x30   :  { %v230_v35 = vsel %vm212_vm3, %v223_v29, 0.0  ;;  %v231_v36 = vsel %vm215_vm5, %v227_v30, 0.0  ;;  %v258_v37 = vsel %vm215_vm5, 1.0, %v513_v1  ;;  %v184_v42 = vcombine.low %v172_v28, %v181_v39 }
  0x31   :  { %v234_v40 = vcombine.low %v230_v35, %v231_v36  ;;  %v261_v41 = vcombine.low %v257_v33, %v258_v37  ;;  %199 = vst [vmem:[#allocation3] sm:$0x77] %v198_v34 }
  0x32   :  { %v186_v45 = vadd.f32 %v184_v42, %v171_v38 }
  0x33   :  { %v241_v43 = vrot.slane %v234_v40, %v240_v32  ;;  %v268_v44 = vrot.slane %v261_v41, %v240_v32 }
  0x34   :  { %187 = vst [vmem:[#allocation2] sm:$0x77] %v186_v45 }
  0x35   :  { %v248_v48 = vrot.slane %v241_v43, %v240_v32  ;;  %v275_v49 = vrot.slane %v268_v44, %v240_v32 }
  0x37   :  { %v250_v50 = vadd.f32 %v248_v48, %v216_v46  ;;  %v277_v51 = vadd.f32 %v275_v49, %v256_v47 }
  0x38   :  { %v305_v52 = vld [vmem:[#allocation3] sm:$0x77] }
  0x39   :  { %255 = vst.msk [vmem:[#allocation4] sm:$0x3] %vm556_vm0, %v250_v50  ;;  %278 = vst.msk [vmem:[#allocation5] sm:$0x3] %vm556_vm0, %v277_v51  ;;  %v307_v53 = vcombine.high %v305_v52, %v305_v52  ;;  %v309_v57 = vsel %vm289_vm6, %v305_v52, 0.0 }
  0x3b   :  { %v285_v54 = vld [vmem:[#allocation2] sm:$0x77]  ;;  %v310_v60 = vsel %vm289_vm6, %v307_v53, 0.0 }
  0x3c   :  { %v287_v55 = vcombine.high %v285_v54, %v285_v54  ;;  %v290_v56 = vsel %vm289_vm6, %v285_v54, 0.0  ;;  %v311_v8 = vadd.f32 %v310_v60, %v309_v57 }
  0x3e   :  { %v291_v58 = vsel %vm289_vm6, %v287_v55, 0.0 }
  0x3f   :  { %v292_v62 = vadd.f32 %v291_v58, %v290_v56 }
  0x40   :  { %v324_v59 = vld [vmem:[#allocation4] sm:$0x3]  ;;  %v352_v61 = vld [vmem:[#allocation5] sm:$0x3] }
  0x41   :  { %v329_v63 = vrot.slane %v324_v59, %v567_v6  ;;  %v333_v0 = vrot.slane %v324_v59, %v570_v7  ;;  %v357_v1 = vrot.slane %v352_v61, %v567_v6  ;;  %v361_v2 = vrot.slane %v352_v61, %v570_v7  ;;  %293 = vadd.xlane.f32.xlu0 %v292_v62 }
  0x43   :  { %v337_v3 = vsel %vm336_vm7, %v329_v63, 0.0  ;;  %v338_v5 = vsel %vm336_vm7, %v333_v0, 0.0  ;;  %v364_v9 = vsel %vm336_vm7, %v357_v1, 0.0  ;;  %v365_v11 = vsel %vm336_vm7, %v361_v2, 0.0 }
  0x44   :  { %v339_v10 = vadd.f32 %v338_v5, %v337_v3  ;;  %v366_v12 = vadd.f32 %v365_v11, %v364_v9 }
  0x45   :  { %312 = vadd.xlane.f32.xlu0 %v311_v8 }
  0x46   :  { %340 = vadd.xlane.f32.xlu1 %v339_v10 }
  0x4a   :  { %367 = vadd.xlane.f32.xlu1 %v366_v12 }
  0xca   :  { %v294_v13 = vpop.xlane.xlu0 %293 }
  0xcb   :  { %v295_v14 = vrot.slane %v294_v13, 4 }
  0xcd   :  { %v296_v6 = vadd.f32 %v295_v14, %v294_v13 }
  0xce   :  { %v313_v16 = vpop.xlane.xlu0 %312 }
  0xcf   :  { %v341_v15 = vpop.xlane.xlu1 %340  ;;  %v297_v17 = vrot.slane %v296_v6, 2  ;;  %v314_v18 = vrot.slane %v313_v16, 4 }
  0xd0   :  { %v342_v7 = vrot.slane %v341_v15, 4 }
  0xd1   :  { %v315_v20 = vadd.f32 %v314_v18, %v313_v16  ;;  %v298_v22 = vadd.f32 %v297_v17, %v296_v6 }
  0xd2   :  { %v343_v19 = vadd.f32 %v342_v7, %v341_v15 }
  0xd3   :  { %v368_v21 = vpop.xlane.xlu1 %367  ;;  %v316_v25 = vrot.slane %v315_v20, 2  ;;  %v299_v26 = vrot.slane %v298_v22, 1 }
  0xd4   :  { %v344_v23 = vrot.slane %v343_v19, 2  ;;  %v369_v24 = vrot.slane %v368_v21, 4 }
  0xd5   :  { %v317_v29 = vadd.f32 %v316_v25, %v315_v20  ;;  %v300_v30 = vadd.f32 %v299_v26, %v298_v22 }
  0xd6   :  { %v370_v27 = vadd.f32 %v369_v24, %v368_v21  ;;  %v345_v28 = vadd.f32 %v344_v23, %v343_v19 }
  0xd7   :  { %407 = vpush %v300_v30  ;;  %v318_v33 = vrot.slane %v317_v29, 1 }
  0xd8   :  { %v371_v31 = vrot.slane %v370_v27, 2  ;;  %v346_v32 = vrot.slane %v345_v28, 1 }
  0xd9   :  { %v319_v35 = vadd.f32 %v318_v33, %v317_v29 }
  0xda   :  { %v372_v34 = vadd.f32 %v371_v31, %v370_v27  ;;  %v347_v36 = vadd.f32 %v346_v32, %v345_v28 }
  0xdb   :  { %409 = vpush %v319_v35 }
  0xdc   :  { %v373_v37 = vrot.slane %v372_v34, 1  ;;  %411 = vpush %v347_v36 }
  0xde   :  { %v374_v38 = vadd.f32 %v373_v37, %v372_v34 }
  0xe0   :  { %413 = vpush %v374_v38 }
 0x108   :  { %s408_s3 = spop %407 }
 0x109   :  { %v302_v39 = vstv %s408_s3 }
 0x10a   :  { %v303_v40 = vsel %vm284_vm8, %v302_v39, 0.0 }
 0x10c   :  { %s410_s4 = spop %409 }
 0x10d   :  { %v321_v41 = vstv %s410_s4  ;;  %s412_s9 = spop %411 }
 0x10e   :  { %v322_v42 = vsel %vm304_vm9, %v321_v41, %v303_v40  ;;  %v349_v43 = vstv %s412_s9 }
 0x10f   :  { %v350_v44 = vsel %vm323_vm10, %v349_v43, %v322_v42 }
 0x111   :  { %s414_s12 = spop %413 }
 0x112   :  { %v376_v45 = vstv %s414_s12 }
 0x113   :  { %v377_v46 = vsel %vm351_vm11, %v376_v45, %v350_v44 }
 0x114   :  { %378 = vst [vmem:[#allocation12] sm:$0xff] %v377_v46 }
 0x115   :  { %495 = shalt.err (!%p492_p5)
}
 0x116   :  { %388 = dma.vmem_to_hbm [thread:$0]  %s386_s11, 128, %s610_s5, [#allocation8]  }
 0x117   :  { %508 = dma.done.wait [#allocation8], 128  }
 0x118   :  { %509 = vsyncadd [#allocation8], 4294967168 }
 0x119   :  { %392 = vsyncpa [#allocation7], 1 }
 0x11a   :  { %393 = vsyncpa [#allocation10], 1 }
 0x11b   :  { %394 = vsyncpa [#allocation8], 1 }

</bundles_post_ra>
